<compile_context>
chip_gen: v7x
topology: tpu7x:2x2x1
jax: 0.10.0
libtpu: 0.0.40
codegen_flags: <defaults>
</compile_context>

<pallas_src>
import jax
import jax.numpy as jnp
from jax import lax
from jax.experimental import pallas as pl
from jax.experimental.pallas import tpu as pltpu


def _pam_kernel(x_ref, wb_ref, bb_ref, wc_ref, bc_ref, wd_ref, bd_ref,
                alpha_ref, out_ref, fb_ref, fc_ref, fd_ref):
    """One (batch, query-tile) grid step.

    x_ref    : (1, C, N) f32   full spatial slab for this batch (resident over q)
    wb/wc/wd : bf16 projection weights (VMEM)
    bb/bc/bd : (C_out, 1) f32 biases (VMEM)
    alpha_ref: (1,) f32 in SMEM
    out_ref  : (1, C, TQ) f32  output slab for queries [q*TQ, (q+1)*TQ)
    fb_ref   : (C8, N) bf16 scratch -- conv_b(x), computed once per batch
    fc_ref   : (C8, N) bf16 scratch -- conv_c(x), computed once per batch
    fd_ref   : (C,  N) bf16 scratch -- conv_d(x), computed once per batch
    """
    q = pl.program_id(1)
    TQ = out_ref.shape[2]

    # ---- per-batch projections, hoisted to the first query tile --------------
    @pl.when(q == 0)
    def _():
        x_bf = x_ref[0].astype(jnp.bfloat16)                        # (C, N)
        fb = jnp.dot(wb_ref[...], x_bf,
                     preferred_element_type=jnp.float32) + bb_ref[...]
        fc = jnp.dot(wc_ref[...], x_bf,
                     preferred_element_type=jnp.float32) + bc_ref[...]
        fd = jnp.dot(wd_ref[...], x_bf,
                     preferred_element_type=jnp.float32) + bd_ref[...]
        fb_ref[...] = fb.astype(jnp.bfloat16)
        fc_ref[...] = fc.astype(jnp.bfloat16)
        fd_ref[...] = fd.astype(jnp.bfloat16)

    # ---- this query tile ------------------------------------------------------
    off = pl.multiple_of(q * TQ, TQ)
    fb_t = fb_ref[:, pl.ds(off, TQ)]                                # (C8, TQ) bf16

    # logits[i, j] = sum_c fb[c, i] * fc[c, j]  -> (TQ, N); contraction over the
    # (small) channel axis, bf16 operands, f32 accumulation on the MXU.
    logits = lax.dot_general(
        fb_t, fc_ref[...],
        dimension_numbers=(((0,), (0,)), ((), ())),
        preferred_element_type=jnp.float32)                         # (TQ, N)

    # Softmax over keys; normalization deferred to the (much smaller) output.
    m = jnp.max(logits, axis=-1, keepdims=True)                     # (TQ, 1) f32
    p = jnp.exp(logits - m)                                         # (TQ, N) f32
    s = jnp.sum(p, axis=-1, keepdims=True)                          # (TQ, 1) f32

    # feat_e[c, i] = sum_j fd[c, j] * p[i, j]  -> (C, TQ); contraction over keys.
    fe = lax.dot_general(
        fd_ref[...], p.astype(jnp.bfloat16),
        dimension_numbers=(((1,), (1,)), ((), ())),
        preferred_element_type=jnp.float32)                         # (C, TQ)

    inv_s = pl.reciprocal(s, approx=True)                           # (TQ, 1)
    fe = fe * jnp.transpose(inv_s)                                  # per-query scale

    xq = x_ref[0, :, pl.ds(off, TQ)]                                # (C, TQ) f32
    out_ref[0] = alpha_ref[0] * fe + xq


def _pick_tq(n, target):
    """Largest 128-multiple <= target that divides n; else n (full extent)."""
    if n <= 128:
        return n
    t = (min(target, n) // 128) * 128
    while t >= 128:
        if n % t == 0:
            return t
        t -= 128
    return n


def position_attention(x, wb, bb, wc, bc, wd, bd, alpha, *, tq=256):
    """x: (B, C, H, W) float32.  Returns (B, C, H, W) float32."""
    B, C, H, W = x.shape
    N = H * W
    C8 = wb.shape[0]
    TQ = _pick_tq(N, tq)
    xf = x.reshape(B, C, N).astype(jnp.float32)

    # Weights cast once on the host side; biases stay f32 (added post-matmul).
    wb_bf = wb.astype(jnp.bfloat16)
    wc_bf = wc.astype(jnp.bfloat16)
    wd_bf = wd.astype(jnp.bfloat16)

    # VMEM budget: x slab (double-buffered) + bf16 projection scratch +
    # logits/exp temporaries + small tiles/weights, with headroom.  Cap at
    # 64 MiB so the request is valid on v7x as well as v5e/v6e.
    est = (
        2 * C * N * 4                        # x f32 slab (double-buffered)
        + 2 * C * TQ * 4                     # output tile (double-buffered)
        + (2 * C8 * N + C * N) * 2           # bf16 fb / fc / fd scratch
        + C * N * 2                          # bf16 cast of x at q == 0
        + 3 * TQ * N * 4                     # logits / exp temporaries
        + 4 * C * TQ * 4                     # fe / scaling temporaries
        + 2 * (2 * C8 * C + C * C) * 2       # bf16 weights (double-buffered)
        + 2 * (2 * C8 + C + 1) * 4           # biases + alpha
    )
    vmem_limit = int(min(max(int(est * 1.3), 32 * 1024 * 1024),
                         64 * 1024 * 1024))

    out = pl.pallas_call(
        _pam_kernel,
        out_shape=jax.ShapeDtypeStruct((B, C, N), jnp.float32),
        grid_spec=pltpu.PrefetchScalarGridSpec(
            num_scalar_prefetch=0,
            grid=(B, N // TQ),
            in_specs=[
                pl.BlockSpec((1, C, N), lambda b, q: (b, 0, 0)),   # x (per batch)
                pl.BlockSpec((C8, C), lambda b, q: (0, 0)),        # W_b (bf16)
                pl.BlockSpec((C8, 1), lambda b, q: (0, 0)),        # b_b
                pl.BlockSpec((C8, C), lambda b, q: (0, 0)),        # W_c (bf16)
                pl.BlockSpec((C8, 1), lambda b, q: (0, 0)),        # b_c
                pl.BlockSpec((C, C), lambda b, q: (0, 0)),         # W_d (bf16)
                pl.BlockSpec((C, 1), lambda b, q: (0, 0)),         # b_d
                pl.BlockSpec(memory_space=pltpu.MemorySpace.SMEM), # alpha scalar
            ],
            out_specs=pl.BlockSpec((1, C, TQ), lambda b, q: (b, 0, q)),
            scratch_shapes=[
                pltpu.VMEM((C8, N), jnp.bfloat16),   # feat_b, per-batch persistent
                pltpu.VMEM((C8, N), jnp.bfloat16),   # feat_c, per-batch persistent
                pltpu.VMEM((C, N), jnp.bfloat16),    # feat_d, per-batch persistent
            ],
        ),
        compiler_params=pltpu.CompilerParams(
            dimension_semantics=("parallel", "arbitrary"),
            vmem_limit_bytes=vmem_limit,
        ),
    )(xf, wb_bf, bb.reshape(C8, 1), wc_bf, bc.reshape(C8, 1), wd_bf,
      bd.reshape(C, 1), jnp.asarray(alpha, jnp.float32).reshape(1))

    return out.reshape(B, C, H, W)


def _reference(x, wb, bb, wc, bc, wd, bd, alpha):
    B, C, H, W = x.shape
    N = H * W
    xf = x.reshape(B, C, N)
    fb = jnp.einsum('oc,bcn->bon', wb, xf) + bb[None, :, None]   # (B, C8, N)
    fc = jnp.einsum('oc,bcn->bon', wc, xf) + bc[None, :, None]   # (B, C8, N)
    fd = jnp.einsum('oc,bcn->bon', wd, xf) + bd[None, :, None]   # (B, C,  N)
    logits = jnp.einsum('bci,bcj->bij', fb, fc)                  # (B, N, N)
    attn = jax.nn.softmax(logits, axis=-1)
    fe = jnp.einsum('bcj,bij->bci', fd, attn)                    # (B, C, N)
    return (alpha * fe + xf).reshape(B, C, H, W)


if __name__ == "__main__":
    B, C, H, W = 2, 32, 16, 16        # N = 256 -> 2 query tiles with tq=128
    C8 = C // 8

    key = jax.random.PRNGKey(0)
    k = jax.random.split(key, 7)
    x = jax.random.normal(k[0], (B, C, H, W), jnp.float32)
    wb = jax.random.normal(k[1], (C8, C), jnp.float32) * 0.1   # conv_b weight
    bb = jax.random.normal(k[2], (C8,), jnp.float32) * 0.1
    wc = jax.random.normal(k[3], (C8, C), jnp.float32) * 0.1   # conv_c weight
    bc = jax.random.normal(k[4], (C8,), jnp.float32) * 0.1
    wd = jax.random.normal(k[5], (C, C), jnp.float32) * 0.1    # conv_d weight
    bd = jax.random.normal(k[6], (C,), jnp.float32) * 0.1
    # nn.Parameter(torch.zeros(1)) -> use a nonzero value so the attention path
    # is actually exercised/verified.
    alpha = jnp.float32(0.1)

    out = position_attention(x, wb, bb, wc, bc, wd, bd, alpha, tq=128)
    jax.block_until_ready(out)

    ref = _reference(x, wb, bb, wc, bc, wd, bd, alpha)
    assert out.shape == (B, C, H, W)
    # bf16 MXU operands (f32 accumulation) + approx reciprocal vs a pure-f32
    # reference -> relaxed tolerance.
    err = float(jnp.max(jnp.abs(out - ref)))
    assert jnp.allclose(out, ref, atol=2e-2, rtol=2e-2), f"mismatch, max err {err}"

    print("KERNEL_OK")
</pallas_src>

<mosaic_0001>
module attributes {stable_mosaic.version = 11 : i64} {
  func.func @_pam_kernel(%arg0: i32, %arg1: i32, %arg2: memref<1x32x256xf32, #tpu.memory_space<vmem>>, %arg3: memref<4x32xbf16, #tpu.memory_space<vmem>>, %arg4: memref<4x1xf32, #tpu.memory_space<vmem>>, %arg5: memref<4x32xbf16, #tpu.memory_space<vmem>>, %arg6: memref<4x1xf32, #tpu.memory_space<vmem>>, %arg7: memref<32x32xbf16, #tpu.memory_space<vmem>>, %arg8: memref<32x1xf32, #tpu.memory_space<vmem>>, %arg9: memref<1xf32, #tpu.memory_space<smem>>, %arg10: memref<1x32x128xf32, #tpu.memory_space<vmem>>, %arg11: memref<4x256xbf16, #tpu.memory_space<vmem>>, %arg12: memref<4x256xbf16, #tpu.memory_space<vmem>>, %arg13: memref<32x256xbf16, #tpu.memory_space<vmem>>) attributes {dimension_semantics = [#tpu.dimension_semantics<parallel>, #tpu.dimension_semantics<arbitrary>], iteration_bounds = array<i64: 2, 2>, scalar_prefetch = 0 : i64, scratch_operands = 3 : i64, tpu.core_type = #tpu.core_type<tc>, window_params = [{transform_indices = @transform_0, window_bounds = array<i64: 1, 32, 256>}, {pipeline_mode = #tpu.pipeline_mode<synchronous>, transform_indices = @transform_1, window_bounds = array<i64: 4, 32>}, {pipeline_mode = #tpu.pipeline_mode<synchronous>, transform_indices = @transform_2, window_bounds = array<i64: 4, 1>}, {pipeline_mode = #tpu.pipeline_mode<synchronous>, transform_indices = @transform_3, window_bounds = array<i64: 4, 32>}, {pipeline_mode = #tpu.pipeline_mode<synchronous>, transform_indices = @transform_4, window_bounds = array<i64: 4, 1>}, {pipeline_mode = #tpu.pipeline_mode<synchronous>, transform_indices = @transform_5, window_bounds = array<i64: 32, 32>}, {pipeline_mode = #tpu.pipeline_mode<synchronous>, transform_indices = @transform_6, window_bounds = array<i64: 32, 1>}, {transform_indices = @transform_7, window_bounds = array<i64: 1>}, {transform_indices = @transform_8, window_bounds = array<i64: 1, 32, 128>}]} {
    %c0_i32 = arith.constant 0 : i32
    %0 = arith.cmpi eq, %arg1, %c0_i32 : i32
    %1 = arith.extui %0 : i1 to i32
    %c0_i32_0 = arith.constant 0 : i32
    %2 = arith.cmpi ne, %1, %c0_i32_0 : i32
    scf.if %2 {
      %c0_14 = arith.constant 0 : index
      %c0_15 = arith.constant 0 : index
      %c0_16 = arith.constant 0 : index
      %33 = vector.load %arg2[%c0_14, %c0_15, %c0_16] : memref<1x32x256xf32, #tpu.memory_space<vmem>>, vector<1x32x256xf32>
      %34 = vector.shape_cast %33 : vector<1x32x256xf32> to vector<32x256xf32>
      %35 = arith.truncf %34 : vector<32x256xf32> to vector<32x256xbf16>
      %c0_17 = arith.constant 0 : index
      %c0_18 = arith.constant 0 : index
      %36 = vector.load %arg3[%c0_17, %c0_18] : memref<4x32xbf16, #tpu.memory_space<vmem>>, vector<4x32xbf16>
      %cst_19 = arith.constant dense<0.000000e+00> : vector<4x256xf32>
      %37 = tpu.matmul %36, %35, %cst_19 {dimension_numbers = #tpu.dot_dimension_numbers<[1], [0], [0], [1], [0, 0, 1, 1], [], []>} : vector<4x32xbf16>, vector<32x256xbf16>, vector<4x256xf32> -> vector<4x256xf32>
      %c0_20 = arith.constant 0 : index
      %c0_21 = arith.constant 0 : index
      %38 = vector.load %arg4[%c0_20, %c0_21] : memref<4x1xf32, #tpu.memory_space<vmem>>, vector<4x1xf32>
      %39 = vector.broadcast %38 : vector<4x1xf32> to vector<4x256xf32>
      %40 = arith.addf %37, %39 : vector<4x256xf32>
      %c0_22 = arith.constant 0 : index
      %c0_23 = arith.constant 0 : index
      %41 = vector.load %arg5[%c0_22, %c0_23] : memref<4x32xbf16, #tpu.memory_space<vmem>>, vector<4x32xbf16>
      %cst_24 = arith.constant dense<0.000000e+00> : vector<4x256xf32>
      %42 = tpu.matmul %41, %35, %cst_24 {dimension_numbers = #tpu.dot_dimension_numbers<[1], [0], [0], [1], [0, 0, 1, 1], [], []>} : vector<4x32xbf16>, vector<32x256xbf16>, vector<4x256xf32> -> vector<4x256xf32>
      %c0_25 = arith.constant 0 : index
      %c0_26 = arith.constant 0 : index
      %43 = vector.load %arg6[%c0_25, %c0_26] : memref<4x1xf32, #tpu.memory_space<vmem>>, vector<4x1xf32>
      %44 = vector.broadcast %43 : vector<4x1xf32> to vector<4x256xf32>
      %45 = arith.addf %42, %44 : vector<4x256xf32>
      %c0_27 = arith.constant 0 : index
      %c0_28 = arith.constant 0 : index
      %46 = vector.load %arg7[%c0_27, %c0_28] : memref<32x32xbf16, #tpu.memory_space<vmem>>, vector<32x32xbf16>
      %cst_29 = arith.constant dense<0.000000e+00> : vector<32x256xf32>
      %47 = tpu.matmul %46, %35, %cst_29 {dimension_numbers = #tpu.dot_dimension_numbers<[1], [0], [0], [1], [0, 0, 1, 1], [], []>} : vector<32x32xbf16>, vector<32x256xbf16>, vector<32x256xf32> -> vector<32x256xf32>
      %c0_30 = arith.constant 0 : index
      %c0_31 = arith.constant 0 : index
      %48 = vector.load %arg8[%c0_30, %c0_31] : memref<32x1xf32, #tpu.memory_space<vmem>>, vector<32x1xf32>
      %49 = vector.broadcast %48 : vector<32x1xf32> to vector<32x256xf32>
      %50 = arith.addf %47, %49 : vector<32x256xf32>
      %51 = arith.truncf %40 : vector<4x256xf32> to vector<4x256xbf16>
      %c0_32 = arith.constant 0 : index
      %c0_33 = arith.constant 0 : index
      %52 = vector.load %arg11[%c0_32, %c0_33] : memref<4x256xbf16, #tpu.memory_space<vmem>>, vector<4x256xbf16>
      tpu.vector_store %arg11[%c0_32, %c0_33], %51 {strides = array<i32>} : memref<4x256xbf16, #tpu.memory_space<vmem>>, vector<4x256xbf16>,
      %53 = arith.truncf %45 : vector<4x256xf32> to vector<4x256xbf16>
      %c0_34 = arith.constant 0 : index
      %c0_35 = arith.constant 0 : index
      %54 = vector.load %arg12[%c0_34, %c0_35] : memref<4x256xbf16, #tpu.memory_space<vmem>>, vector<4x256xbf16>
      tpu.vector_store %arg12[%c0_34, %c0_35], %53 {strides = array<i32>} : memref<4x256xbf16, #tpu.memory_space<vmem>>, vector<4x256xbf16>,
      %55 = arith.truncf %50 : vector<32x256xf32> to vector<32x256xbf16>
      %c0_36 = arith.constant 0 : index
      %c0_37 = arith.constant 0 : index
      %56 = vector.load %arg13[%c0_36, %c0_37] : memref<32x256xbf16, #tpu.memory_space<vmem>>, vector<32x256xbf16>
      tpu.vector_store %arg13[%c0_36, %c0_37], %55 {strides = array<i32>} : memref<32x256xbf16, #tpu.memory_space<vmem>>, vector<32x256xbf16>,
    } else {
    }
    %c128_i32 = arith.constant 128 : i32
    %3 = arith.muli %arg1, %c128_i32 : i32
    %4 = tpu.assume_multiple %3, 128 : i32
    %c0 = arith.constant 0 : index
    %5 = arith.index_cast %4 : i32 to index
    %6 = vector.load %arg11[%c0, %5] : memref<4x256xbf16, #tpu.memory_space<vmem>>, vector<4x128xbf16>
    %c0_1 = arith.constant 0 : index
    %c0_2 = arith.constant 0 : index
    %7 = vector.load %arg12[%c0_1, %c0_2] : memref<4x256xbf16, #tpu.memory_space<vmem>>, vector<4x256xbf16>
    %cst = arith.constant dense<0.000000e+00> : vector<128x256xf32>
    %8 = tpu.matmul %6, %7, %cst {dimension_numbers = #tpu.dot_dimension_numbers<[0], [0], [1], [1], [0, 1, 1, 1], [], []>} : vector<4x128xbf16>, vector<4x256xbf16>, vector<128x256xf32> -> vector<128x256xf32>
    %cst_3 = arith.constant dense<0xFF800000> : vector<128xf32>
    %9 = vector.multi_reduction <maximumf>, %8, %cst_3 [1] : vector<128x256xf32> to vector<128xf32>
    %10 = vector.shape_cast %9 : vector<128xf32> to vector<128x1xf32>
    %11 = vector.broadcast %10 : vector<128x1xf32> to vector<128x256xf32>
    %12 = arith.subf %8, %11 : vector<128x256xf32>
    %13 = math.exp %12 : vector<128x256xf32>
    %cst_4 = arith.constant dense<0.000000e+00> : vector<128xf32>
    %14 = vector.multi_reduction <add>, %13, %cst_4 [1] : vector<128x256xf32> to vector<128xf32>
    %15 = vector.shape_cast %14 : vector<128xf32> to vector<128x1xf32>
    %c0_5 = arith.constant 0 : index
    %c0_6 = arith.constant 0 : index
    %16 = vector.load %arg13[%c0_5, %c0_6] : memref<32x256xbf16, #tpu.memory_space<vmem>>, vector<32x256xbf16>
    %17 = arith.truncf %13 : vector<128x256xf32> to vector<128x256xbf16>
    %cst_7 = arith.constant dense<0.000000e+00> : vector<32x128xf32>
    %18 = tpu.matmul %16, %17, %cst_7 {dimension_numbers = #tpu.dot_dimension_numbers<[1], [1], [0], [0], [0, 0, 1, 0], [], []>} : vector<32x256xbf16>, vector<128x256xbf16>, vector<32x128xf32> -> vector<32x128xf32>
    %19 = tpu.reciprocal %15 {approx = true} : vector<128x1xf32> -> vector<128x1xf32>
    %20 = tpu.transpose %19, [1, 0] : vector<128x1xf32> -> vector<1x128xf32>
    %21 = vector.broadcast %20 : vector<1x128xf32> to vector<32x128xf32>
    %22 = arith.mulf %18, %21 : vector<32x128xf32>
    %c0_8 = arith.constant 0 : index
    %c0_9 = arith.constant 0 : index
    %23 = arith.index_cast %4 : i32 to index
    %24 = vector.load %arg2[%c0_8, %c0_9, %23] : memref<1x32x256xf32, #tpu.memory_space<vmem>>, vector<1x32x128xf32>
    %25 = vector.shape_cast %24 : vector<1x32x128xf32> to vector<32x128xf32>
    %c0_10 = arith.constant 0 : index
    %26 = memref.load %arg9[%c0_10] : memref<1xf32, #tpu.memory_space<smem>>
    %27 = vector.broadcast %26 : f32 to vector<32x128xf32>
    %28 = arith.mulf %27, %22 : vector<32x128xf32>
    %29 = arith.addf %28, %25 : vector<32x128xf32>
    %c0_11 = arith.constant 0 : index
    %c0_12 = arith.constant 0 : index
    %c0_13 = arith.constant 0 : index
    %30 = vector.load %arg10[%c0_11, %c0_12, %c0_13] : memref<1x32x128xf32, #tpu.memory_space<vmem>>, vector<1x32x128xf32>
    %31 = vector.shape_cast %30 : vector<1x32x128xf32> to vector<32x128xf32>
    %32 = vector.shape_cast %29 : vector<32x128xf32> to vector<1x32x128xf32>
    tpu.vector_store %arg10[%c0_11, %c0_12, %c0_13], %32 {strides = array<i32>} : memref<1x32x128xf32, #tpu.memory_space<vmem>>, vector<1x32x128xf32>,
    return
  }
  func.func @transform_0(%arg0: i32, %arg1: i32) -> (i32, i32, i32) {
    %c0_i32 = arith.constant 0 : i32
    %c0_i32_0 = arith.constant 0 : i32
    %c0_i32_1 = arith.constant 0 : i32
    return %arg0, %c0_i32, %c0_i32_0 : i32, i32, i32
  }
  func.func @transform_1(%arg0: i32, %arg1: i32) -> (i32, i32) {
    %c0_i32 = arith.constant 0 : i32
    %c0_i32_0 = arith.constant 0 : i32
    %c0_i32_1 = arith.constant 0 : i32
    return %c0_i32, %c0_i32_0 : i32, i32
  }
  func.func @transform_2(%arg0: i32, %arg1: i32) -> (i32, i32) {
    %c0_i32 = arith.constant 0 : i32
    %c0_i32_0 = arith.constant 0 : i32
    %c0_i32_1 = arith.constant 0 : i32
    return %c0_i32, %c0_i32_0 : i32, i32
  }
  func.func @transform_3(%arg0: i32, %arg1: i32) -> (i32, i32) {
    %c0_i32 = arith.constant 0 : i32
    %c0_i32_0 = arith.constant 0 : i32
    %c0_i32_1 = arith.constant 0 : i32
    return %c0_i32, %c0_i32_0 : i32, i32
  }
  func.func @transform_4(%arg0: i32, %arg1: i32) -> (i32, i32) {
    %c0_i32 = arith.constant 0 : i32
    %c0_i32_0 = arith.constant 0 : i32
    %c0_i32_1 = arith.constant 0 : i32
    return %c0_i32, %c0_i32_0 : i32, i32
  }
  func.func @transform_5(%arg0: i32, %arg1: i32) -> (i32, i32) {
    %c0_i32 = arith.constant 0 : i32
    %c0_i32_0 = arith.constant 0 : i32
    %c0_i32_1 = arith.constant 0 : i32
    return %c0_i32, %c0_i32_0 : i32, i32
  }
  func.func @transform_6(%arg0: i32, %arg1: i32) -> (i32, i32) {
    %c0_i32 = arith.constant 0 : i32
    %c0_i32_0 = arith.constant 0 : i32
    %c0_i32_1 = arith.constant 0 : i32
    return %c0_i32, %c0_i32_0 : i32, i32
  }
  func.func @transform_7(%arg0: i32, %arg1: i32) -> i32 {
    %c0_i32 = arith.constant 0 : i32
    %c0_i32_0 = arith.constant 0 : i32
    return %c0_i32 : i32
  }
  func.func @transform_8(%arg0: i32, %arg1: i32) -> (i32, i32, i32) {
    %c0_i32 = arith.constant 0 : i32
    %c0_i32_0 = arith.constant 0 : i32
    return %arg0, %c0_i32, %arg1 : i32, i32, i32
  }
}

</mosaic_0001>

<bundles_post_ra>
// kernel: tpu_custom_call.1
= control target key start
LH: loop header
LB: loop body
LE: loop exit
PB: predicated region body
PF: predicated region fallthrough
CT: control target
= control target key end

     0   :  { %s2107_s0 = inlined_call_operand.hbm [shape: f32[2,32,256], index: 0, kind: input, shape index: {}]   ;;  %s2108_s1 = inlined_call_operand.vmem [shape: bf16[4,32], index: 1, kind: input, shape index: {}]   ;;  %s2109_s2 = inlined_call_operand.vmem [shape: f32[4,1], index: 2, kind: input, shape index: {}]   ;;  %s2110_s3 = inlined_call_operand.vmem [shape: bf16[4,32], index: 3, kind: input, shape index: {}]   ;;  %s2111_s4 = inlined_call_operand.vmem [shape: f32[4,1], index: 4, kind: input, shape index: {}]   ;;  %s2112_s5 = inlined_call_operand.vmem [shape: bf16[32,32], index: 5, kind: input, shape index: {}]   ;;  %s2113_s6 = inlined_call_operand.vmem [shape: f32[32,1], index: 6, kind: input, shape index: {}]   ;;  %s2114_s7 = inlined_call_operand.<no memory space> [shape: f32[1], index: 7, kind: input, shape index: {}]   ;;  %s2115_s8 = inlined_call_operand.hbm [shape: f32[2,32,256], index: 8, kind: output, shape index: {}]  }
   0x1   :  { %2123 = sst [smem:[#allocation16_spill]] %s2115_s8 }
   0x2   :  { %13 = sst [smem:[#allocation5]] %s2114_s7 }
   0x3   :  { %14 = vsyncpa [#allocation7], 0 }
   0x4   :  { %16 = vsyncpa [#allocation7 + $0x1], 0 }
   0x5   :  { %17 = vsyncpa [#allocation8], 0 }
   0x6   :  { %19 = vsyncpa [#allocation8 + $0x1], 0  ;;  %s1687_s29 = smov 0   ;;  %s1689_s30 = smov 0  }
   0x7   :  { %s1691_s9 = smov 0   ;;  %s1693_s10 = smov 0  }
   0x8   :  { %s1695_s11 = smov 0   ;;  %s1697_s12 = smov 0  }
   0x9   :  { %s1699_s13 = smov 0   ;;  %s1701_s14 = smov 0  }
   0xa   :  { %s1703_s7 = smov 0   ;;  %s1705_s15 = smov 0  }
   0xb   :  { %s1707_s16 = smov 0  }
   0xc LB: > { %2124 = sst [smem:[#allocation12_spill]] %s1620_s7  ;;  %s1211_s17 = sadd.s32 4294967295, %s1628_s16   ;;  %s1628_s16 = sphi %s1707_s16, %s25_s16   ;;  %s1624_s15 = sphi %s1705_s15, %s2142_s15   ;;  %s1620_s7 = sphi %s1703_s7, %s2141_s7   ;;  %s1616_s14 = sphi %s1701_s14, %s2140_s14   ;;  %s1612_s13 = sphi %s1699_s13, %s2139_s13   ;;  %s1608_s12 = sphi %s1697_s12, %s2148_s12   ;;  %s1604_s11 = sphi %s1695_s11, %s2147_s11   ;;  %s1600_s10 = sphi %s1693_s10, %s2146_s10   ;;  %s1596_s9 = sphi %s1691_s9, %s2145_s9   ;;  %s1592_s30 = sphi %s1689_s30, %s2144_s30   ;;  %s1588_s29 = sphi %s1687_s29, %s2143_s29  }
   0xd   : > { %2125 = sst [smem:[#allocation13_spill]] %s1624_s15  ;;  %s1212_s18 = sadd.s32 4294967294, %s1628_s16  }
   0xe   : > { %s34_s19 = sadd.s32 1, %s1620_s7  ;;  %s37_s20 = sadd.s32 1, %s1624_s15 }
   0xf   : > { %p35_p0 = scmp.ge.s32.totalorder %s34_s19, 2  ;;  %s44_s21 = sadd.s32 1, %s1608_s12 }
  0x10   : > { %p51_p1 = scmp.ne.s32.totalorder %s1608_s12, %s1604_s11  ;;  %p52_p2 = scmp.eq.s32.totalorder %s1628_s16, 0 }
  0x11   : > { %s2150_s19 = smov (%p35_p0, %s34_s19), 0  ;;  %s2152_s20 = smov (!%p35_p0, %s37_s20), %s1624_s15 }
  0x12   : > { %2126 = sst [smem:[#allocation14_spill]] %s2150_s19  ;;  %p1751_p3 = por %p52_p2, %p51_p1 }
  0x13   : > { %p57_p4 = scmp.ne.s32.totalorder %s1604_s11, %s1600_s10  ;;  %p39_p5 = scmp.ge.s32.totalorder %s2152_s20, 2 }
  0x14   : > { %p58_p6 = scmp.eq.s32.totalorder %s1211_s17, 0  ;;  %s215_s23 = ssub.s32 %s1620_s7, %s2150_s19 }
  0x15   : > { %s219_s24 = sadd.s32 1, %s1596_s9  ;;  %s2154_s20 = smov (%p39_p5, %s2152_s20), 0 }
  0x16   : > { %2128 = sst [smem:[#allocation15_spill]] %s2154_s20  ;;  %p1761_p7 = por %p58_p6, %p57_p4 }
  0x17   : > { %p229_p8 = scmp.ne.s32.totalorder %s1596_s9, %s1592_s30  ;;  %s41_s26 = ssub.s32 %s1624_s15, %s2154_s20 }
  0x18   : > { %p230_p9 = scmp.eq.s32.totalorder %s1211_s17, 3  ;;  %p42_p10 = scmp.eq.s32.totalorder %s41_s26, 0 }
  0x19   : > { %s216_s27 = sor.u32 %s215_s23, %s41_s26  ;;  %p235_p13 = scmp.ne.s32.totalorder %s1592_s30, %s1588_s29 }
  0x1a   : > { %p217_p11 = scmp.eq.s32.totalorder %s216_s27, 0  ;;  %p1769_p12 = por %p230_p9, %p229_p8 }
  0x1b   : > { %s1774_s10 = scalar_select %p42_p10, %s1608_s12, %s44_s21  }
  0x1c   : > { %s2130_s28 = scalar_select %p1769_p12, 1, 0 }
  0x1d   : > { %s1777_s19 = scalar_select %p217_p11, %s1596_s9, %s219_s24  }
  0x1e   : > { %p236_p0 = scmp.eq.s32.totalorder %s1212_s18, 3  ;;  %p1279_p1 = scmp.lt.s32.totalorder %s1628_s16, 4 }
  0x1f   : > { %s277_s17 = sand.u32 1, %s1608_s12   ;;  %s1250_s26 = sshll.u32 %s1624_s15, 10 }
  0x20   : > { %p1782_p2 = por %p236_p0, %p235_p13  ;;  %s1215_s23 = sshll.u32 %s277_s17, 6 }
  0x21   : > { %s1791_s8 = scalar_lea.hbm %s2107_s0, %s1250_s26  ;;  %s281_s21 = scalar_lea.vmem [#allocation6], %s1215_s23 }
  0x22   : > { %s2131_s7 = scalar_select %p1782_p2, 1, 0 }
  0x23   : > { %s288_s24 = sshll.u32 %s281_s21, 4  ;;  %p1797_p4 = pnand %p1279_p1, %p1751_p3  ;;  %s1793_s24 = int_to_ptr.vmem [resolvable:$true] %s288_s24 }
  0x24   : > { %s1802_s15 = scalar_lea.sflag [#allocation7], %s277_s17  ;;  %s1476_s20 = scalar_lea.hbm %s1791_s8, 1024 }
  0x25   : > { %p1477_p6 = scmp.ne.s32.totalorder %s1791_s8, %s1476_s20  ;;  %p1478_p8 = pneg %p1797_p4 }
  0x26   : > { %s1481_s22 = scalar_lea.hbm %s2107_s0, 2048  ;;  %p1482_p3 = scmp.lt.u32.totalorder %s1791_s8, %s2107_s0 }
  0x27   : > { %p1479_p9 = pnand %p1478_p8, %p1477_p6  ;;  %p1483_p11 = scmp.lt.u32.totalorder %s1481_s22, %s1476_s20 }
  0x28   : > { %p1485_p0 = scmp.lt.u32.totalorder %s1476_s20, %s1791_s8 }
  0x29   : > { %p1480_p10 = pneg %p1479_p9  ;;  %p1484_p13 = por %p1483_p11, %p1482_p3 }
  0x2b   : > { %p1486_p1 = por %p1485_p0, %p1484_p13 }
  0x2d   : > { %p1487_p5 = pnand %p1486_p1, %p1480_p10 }
  0x2f   : > { %1490 = shalt.err (!%p1487_p5)
}
  0x30   : > { %s1491_s17 = scalar_lea.vmem %s1793_s24, 1024  ;;  %s1630_s23 = smov [#allocation6]  }
  0x31   : > { %p1492_p6 = scmp.ne.s32.totalorder %s1793_s24, %s1491_s17  ;;  %s1496_s26 = sshll.u32 %s1630_s23, 4  ;;  %s1497_s26 = int_to_ptr.vmem [resolvable:$false] %s1496_s26 }
  0x32   : > { %s1498_s27 = scalar_lea.vmem %s1497_s26, 2048  ;;  %p1499_p12 = scmp.lt.s32.totalorder %s1793_s24, %s1497_s26 }
  0x33   : > { %p1494_p9 = pnand %p1492_p6, %p1478_p8  ;;  %p1500_p3 = scmp.lt.s32.totalorder %s1498_s27, %s1491_s17 }
  0x35   : > { %p1495_p2 = pneg %p1494_p9  ;;  %p1501_p11 = por %p1500_p3, %p1499_p12 }
  0x37   : > { %p1502_p13 = pnand %p1501_p11, %p1495_p2 }
  0x39   : > { %1505 = shalt.err (!%p1502_p13)
}
  0x3a   : > { %s1631_s20 = smov 256   ;;  %s1632_s22 = smov 16  }
  0x3b   : > { %1274 = dma.hbm_to_vmem [thread:$0]  (!%p1797_p4), %s1791_s8, 1024, %s1793_s24, %s1802_s15, %s1631_s20, %s1631_s20, %s1632_s22  }
  0x3c   : > { %p296_p5 = scmp.lt.s32.totalorder %s1628_s16, 5  ;;  %p2133_p8 = scmp.ge.s32.totalorder %s1628_s16, 1 }
  0x3e   : > { %p297_p10 = pnand %p2133_p8, %p296_p5 }
  0x3f   : > { %s302_s21 = sand.u32 (!%p297_p10), 1, %s1604_s11  }
  0x40   : > { %300 = sbr.rel (%p297_p10) target bundleno = 1104 (0x450), region = 52  ;;  %s1219_s17 = sshll.u32 (!%p297_p10), %s302_s21, 6 }
  0x41   : > { %s303_s23 = scalar_lea.sflag (!%p297_p10), [#allocation7], %s302_s21  ;;  %s1834_s26 = scalar_lea.vmem (!%p297_p10), [#allocation6], %s1219_s17 }
  0x47   : > { %1579 = dma.done.wait (%p1761_p7), %s303_s23, 1024  }
  0x48   : > { %1581 = vsyncadd (%p1761_p7), %s303_s23, 4294966272  ;;  %s2122_s18 = sand.u32 1, %s1592_s30   ;;  %p1221_p12 = scmp.ne.s32.totalorder %s1612_s13, 0 }
  0x49   : > { %s1220_s8 = sshll.u32 %s2122_s18, 5  ;;  %v345_v0 = vld [vmem:[%s1834_s26 + $0x8] sm:$0xff] (!%p1221_p12)  ;;  %v347_v1 = vld [vmem:[%s1834_s26 + $0x18] sm:$0xff] (!%p1221_p12)  ;;  %v344_v2 = vld [vmem:[%s1834_s26] sm:$0xff] (!%p1221_p12)  ;;  %v1633_v7 = vmov (!%p1221_p12), 0   ;;  %vm363_vm0 = vcmask (!%p1221_p12), 261120  }
  0x4a   : > { %s1843_s15 = scalar_lea.vmem [#allocation9], %s1220_s8  ;;  %343 = sbr.rel (%p1221_p12) target bundleno = 312 (0x138), region = 60  ;;  %v353_v3 = vpack.c.bf16 (!%p1221_p12), %v347_v1, %v345_v0  ;;  %v346_v4 = vld [vmem:[%s1834_s26 + $0x10] sm:$0xff] (!%p1221_p12)  ;;  %v349_v5 = vld [vmem:[%s1834_s26 + $0x28] sm:$0xff] (!%p1221_p12)  ;;  %v351_v6 = vld [vmem:[%s1834_s26 + $0x38] sm:$0xff] (!%p1221_p12)  ;;  %399 = vmatprep.mubr.bf16.mxu1 (!%p1221_p12), %v1633_v7  ;;  %535 = vmatprep.mubr.bf16.mxu0 (!%p1221_p12), %v1633_v7 }
  0x4b   : > { %v352_v8 = vpack.c.bf16 (!%p1221_p12), %v346_v4, %v344_v2  ;;  %v355_v9 = vpack.c.bf16 (!%p1221_p12), %v351_v6, %v349_v5  ;;  %v348_v10 = vld [vmem:[%s1834_s26 + $0x20] sm:$0xff] (!%p1221_p12)  ;;  %v350_v11 = vld [vmem:[%s1834_s26 + $0x30] sm:$0xff] (!%p1221_p12)  ;;  %1377 = vset.pattern.permute.xlu1 (!%p1221_p12), %v1633_v7  ;;  %1376 = vset.pattern.permute.xlu0 (!%p1221_p12), %v1633_v7  ;;  %v463_v13 = vld [vmem:[%s2113_s6] sm:$0xff] (!%p1221_p12) }
  0x4c   : > { %367 = vmatprep.subr.bf16.mxu1 (!%p1221_p12), %v353_v3  ;;  %503 = vmatprep.subr.bf16.mxu0 (!%p1221_p12), %v353_v3  ;;  %v354_v12 = vpack.c.bf16 (!%p1221_p12), %v350_v11, %v348_v10  ;;  %v357_v14 = vld [vmem:[%s2109_s2] sm:$0xf] (!%p1221_p12)  ;;  %v464_v16 = vld [vmem:[%s2113_s6 + $0x8] sm:$0xff] (!%p1221_p12)  ;;  %v466_v19 = vld [vmem:[%s2113_s6 + $0x18] sm:$0xff] (!%p1221_p12) }
  0x4d   : > { %368 = vmatpush1.bf16.msra.mxu1 (!%p1221_p12), %v352_v8  ;;  %504 = vmatpush1.bf16.msra.mxu0 (!%p1221_p12), %v352_v8  ;;  %v1378_v15 = vld [vmem:[%s2112_s5] sm:$0xff] (!%p1221_p12)   ;;  %v465_v20 = vld [vmem:[%s2113_s6 + $0x10] sm:$0xff] (!%p1221_p12)  ;;  %v1379_v21 = vld [vmem:[%s2112_s5 + $0x8] sm:$0xff] (!%p1221_p12)  }
  0x4e   : > { %369 = vmatprep.subr.bf16.mxu1 (!%p1221_p12), %v355_v9  ;;  %505 = vmatprep.subr.bf16.mxu0 (!%p1221_p12), %v355_v9  ;;  %v409_v17 = vld [vmem:[%s2111_s4] sm:$0xf] (!%p1221_p12) }
  0x4f   : > { %469 = vperm.xlu1 (!%p1221_p12), %1377, %v463_v13   ;;  %360 = vperm.xlu0 (!%p1221_p12), %1376, %v357_v14   ;;  %v356_v18 = vld [vmem:[%s2108_s1] sm:$0x3] (!%p1221_p12) }
  0x50   : > { %v408_v22 = vld [vmem:[%s2110_s3] sm:$0x3] (!%p1221_p12) }
  0x51   : > { %370 = vmatpush1.bf16.msra.mxu1 %v354_v12  ;;  %506 = vmatpush1.bf16.msra.mxu0 %v354_v12 }
  0x52   : > { %418 = vmatprep.subr.bf16.mxu1 %v353_v3 }
  0x53   : > { %474 = vperm.xlu1 %1377, %v464_v16   ;;  %412 = vperm.xlu0 %1376, %v409_v17  }
  0x54   : > { %1222 = vmatmul.mubr.msk.bf16.vlgmr.msra.gmra.mrb[0].mxu1 %vm363_vm0, %v356_v18  ;;  %1226 = vmatmul.mubr.msk.bf16.vlgmr.msra.gmra.mrb[0].mxu0 %vm363_vm0, %v1378_v15 }
  0x55   : > { %419 = vmatpush1.bf16.msra.mxu1 %v352_v8  ;;  %450 = vmatprep.mubr.bf16.mxu1 %v1633_v7 }
  0x56   : > { %420 = vmatprep.subr.bf16.mxu1 %v355_v9  ;;  %545 = vmatprep.mubr.bf16.mxu0 %v1633_v7 }
  0x57   : > { %484 = vperm.xlu1 %1377, %v466_v19   ;;  %479 = vperm.xlu0 %1376, %v465_v20  }
  0x59   : > { %421 = vmatpush1.bf16.msra.mxu1 %v354_v12 }
  0x5c   : > { %1223 = vmatmul.mubr.msk.bf16.vlgmr.msra.gmra.mrb[4].mxu1 %vm363_vm0, %v408_v22  ;;  %1227 = vmatmul.mubr.msk.bf16.gmra.mrb[4].mxu0 %vm363_vm0, %v1379_v21 }
  0xce   : > { %v470_v23 = vpop.permute.xlu1 %469  ;;  %v361_v24 = vpop.permute.xlu0 %360 }
  0xd2   : > { %v475_v25 = vpop.permute.xlu1 %474  ;;  %v413_v26 = vpop.permute.xlu0 %412 }
  0xd6   : > { %v485_v44 = vpop.permute.xlu1 %484  ;;  %v480_v45 = vpop.permute.xlu0 %479 }
 0x127   : > { %v401_v27 = vpop.f32.mrb[0].mxu1  ;;  %v537_v28 = vpop.f32.mrb[0].mxu0 }
 0x128   : > { %v402_v29 = vadd.f32 %v401_v27, %v361_v24  ;;  %v403_v30 = vpop.f32.mrb[1].mxu1  ;;  %v539_v31 = vpop.f32.mrb[1].mxu0  ;;  %v538_v35 = vadd.f32 %v537_v28, %v470_v23 }
 0x129   : > { %v404_v32 = vadd.f32 %v403_v30, %v361_v24  ;;  %v405_v33 = vpop.f32.mrb[2].mxu1  ;;  %v541_v34 = vpop.f32.mrb[2].mxu0  ;;  %v540_v40 = vadd.f32 %v539_v31, %v470_v23 }
 0x12a   : > { %v542_v36 = vadd.f32 %v541_v34, %v475_v25  ;;  %v406_v37 = vpop.f32.mrb[3].mxu1  ;;  %v543_v38 = vpop.f32.mrb[3].mxu0 }
 0x12b   : > { %v1228_v39 = vpack.c.bf16 %v404_v32, %v402_v29  ;;  %v544_v41 = vadd.f32 %v543_v38, %v475_v25 }
 0x12c   : > { %v584_v42 = vpack.c.bf16 %v542_v36, %v538_v35 }
 0x12d   : > { %1229 = vst.sshfl [vmem:[#allocation2] sm:$0x33 pattern:$0x76325410] %v1228_v39  ;;  %v585_v43 = vpack.c.bf16 %v544_v41, %v540_v40 }
 0x12e   : > { %588 = vst [vmem:[#allocation4] sm:$0xff] %v584_v42 }
 0x12f   : > { %589 = vst [vmem:[#allocation4 + $0x8] sm:$0xff] %v585_v43  ;;  %v452_v46 = vpop.f32.mrb[4].mxu1  ;;  %v547_v47 = vpop.f32.mrb[4].mxu0 }
 0x130   : > { %v453_v48 = vadd.f32 %v452_v46, %v413_v26  ;;  %v454_v49 = vpop.f32.mrb[5].mxu1  ;;  %v549_v50 = vpop.f32.mrb[5].mxu0  ;;  %v548_v54 = vadd.f32 %v547_v47, %v480_v45 }
 0x131   : > { %v455_v51 = vadd.f32 %v454_v49, %v413_v26  ;;  %v456_v52 = vpop.f32.mrb[6].mxu1  ;;  %v551_v53 = vpop.f32.mrb[6].mxu0  ;;  %v550_v59 = vadd.f32 %v549_v50, %v480_v45 }
 0x132   : > { %v552_v55 = vadd.f32 %v551_v53, %v485_v44  ;;  %v457_v56 = vpop.f32.mrb[7].mxu1  ;;  %v553_v57 = vpop.f32.mrb[7].mxu0 }
 0x133   : > { %v1230_v58 = vpack.c.bf16 %v455_v51, %v453_v48  ;;  %v554_v60 = vadd.f32 %v553_v57, %v485_v44 }
 0x134   : > { %v586_v61 = vpack.c.bf16 %v552_v55, %v548_v54 }
 0x135   : > { %1231 = vst.sshfl [vmem:[#allocation3] sm:$0x33 pattern:$0x76325410] %v1230_v58  ;;  %v587_v62 = vpack.c.bf16 %v554_v60, %v550_v59 }
 0x136   : > { %590 = vst [vmem:[#allocation4 + $0x10] sm:$0xff] %v586_v61 }
 0x137   : > { %591 = vst [vmem:[#allocation4 + $0x18] sm:$0xff] %v587_v62 }
 0x138 PF: > { %s1232_s25 = sshll.u32 %s1612_s13, 7  ;;  %vm649_vm1 = vcmask 1041408   ;;  %v1634_v2 = vmov 0   ;;  %vm624_vm2 = vcmask 31744   ;;  %v962_v60 = vld [vmem:[#allocation4 + $0x8] sm:$0xff]  ;;  %s1092_s18 = sld [smem:[#allocation5]] }
 0x139   : > { %s1889_s24 = sshra.s32 %s1232_s25, 7  ;;  %688 = vmatprep.mubr.bf16.mxu0 %v1634_v2  ;;  %s1246_s22 = sshll.u32 %s1616_s14, 3 }
 0x13a   : > { %s1233_s27 = sshll.u32 %s1889_s24, 1  ;;  %s1244_s21 = sshll.u32 %s1889_s24, 3 }
 0x13b   : > { %s596_s20 = scalar_lea.vmem [#allocation2], %s1233_s27  ;;  %s1118_s17 = sadd.s32 %s1612_s13, %s1246_s22 }
 0x13c   : > { %v1234_v63 = vld.sshfl [vmem:[#allocation3] sm:$0x33 pattern:$0x76325410]  ;;  %v597_v3 = vld [vmem:[%s596_s20] sm:$0x3]  ;;  %s1087_s23 = scalar_lea.vmem %s1834_s26, %s1244_s21 [#allocation6] }
 0x13d   : > { %v623_v0 = vcombine.high %v1234_v63, %v1234_v63  ;;  %v651_v1 = vsel %vm649_vm1, %v1234_v63, 0  ;;  %599 = vxpose.xlu0.c.b16.start.end [1/1] (short) %v597_v3, 128  ;;  %s1247_s8 = sshll.u32 %s1118_s17, 7  ;;  %s1121_s14 = sshll.u32 %s1843_s15, 4  ;;  %s2038_s14 = int_to_ptr.vmem [resolvable:$true] %s1121_s14 }
 0x13e   : > { %v964_v61 = vld [vmem:[#allocation4 + $0x18] sm:$0xff]  ;;  %s2134_s25 = sld [smem:[#allocation16_spill]]  ;;  %s2135_s27 = sand.u32 1, %s1592_s30  }
 0x13f   : > { %1235 = vmatprep.subr.msk.bf16.mxu0 %vm649_vm1, %v623_v0  ;;  %1021 = vmatprep.mubr.bf16.mxu1 %v964_v61  ;;  %s2046_s20 = scalar_lea.sflag [#allocation8], %s2135_s27  ;;  %p2136_p2 = scmp.ne.s32.totalorder %s2130_s28, 0 }
 0x140   : > { %657 = vmatpush1.bf16.msra.mxu0 %v651_v1  ;;  %s1635_s22 = smov [#allocation9]  }
 0x141   : > { %s1510_s21 = sshll.u32 %s1635_s22, 4  ;;  %s1511_s21 = int_to_ptr.vmem [resolvable:$false] %s1510_s21 }
 0x142   : > { %s1512_s17 = scalar_lea.vmem %s1511_s21, 1024  ;;  %p1513_p1 = scmp.lt.s32.totalorder %s2038_s14, %s1511_s21 }
 0x144   : > { %s2036_s24 = scalar_lea.hbm %s2134_s25, %s1247_s8 }
 0x1a3   : > { %v607_v4 = vpop.trf.xlu0 }
 0x1a4   : > { %1236 = vmatmul.mubr.msk.bf16.vlgmr.msra.gmra.mrb[0].mxu0 %vm624_vm2, %v607_v4 }
 0x1a5   : > { %698 = vmatprep.mubr.bf16.mxu0 %v1634_v2 }
 0x1a7   : > { %v608_v5 = vpop.trf.xlu0 }
 0x1ab   : > { %v609_v6 = vpop.trf.xlu0 }
 0x1ac   : > { %1237 = vmatmul.mubr.msk.bf16.gmra.mrb[4].mxu0 %vm624_vm2, %v608_v5 }
 0x1ad   : > { %708 = vmatprep.mubr.bf16.mxu0 %v1634_v2 }
 0x1af   : > { %v610_v7 = vpop.trf.xlu0 }
 0x1b3   : > { %v611_v8 = vpop.trf.xlu0 }
 0x1b4   : > { %1238 = vmatmul.mubr.msk.bf16.gmra.mrb[8].mxu0 %vm624_vm2, %v609_v6 }
 0x1b5   : > { %718 = vmatprep.mubr.bf16.mxu0 %v1634_v2 }
 0x1b7   : > { %v612_v9 = vpop.trf.xlu0 }
 0x1bb   : > { %v613_v10 = vpop.trf.xlu0 }
 0x1bc   : > { %1239 = vmatmul.mubr.msk.bf16.gmra.mrb[12].mxu0 %vm624_vm2, %v610_v7 }
 0x1bd   : > { %728 = vmatprep.mubr.bf16.mxu0 %v1634_v2 }
 0x1bf   : > { %v614_v11 = vpop.trf.xlu0 }
 0x1c4   : > { %1240 = vmatmul.mubr.msk.bf16.gmra.mrb[16].mxu0 %vm624_vm2, %v611_v8 }
 0x1c5   : > { %738 = vmatprep.mubr.bf16.mxu0 %v1634_v2 }
 0x1cc   : > { %1241 = vmatmul.mubr.msk.bf16.gmra.mrb[20].mxu0 %vm624_vm2, %v612_v9 }
 0x1cd   : > { %748 = vmatprep.mubr.bf16.mxu0 %v1634_v2 }
 0x1d4   : > { %1242 = vmatmul.mubr.msk.bf16.gmra.mrb[24].mxu0 %vm624_vm2, %v613_v10 }
 0x1d5   : > { %758 = vmatprep.mubr.bf16.mxu0 %v1634_v2 }
 0x1dc   : > { %1243 = vmatmul.mubr.msk.bf16.gmra.mrb[28].mxu0 %vm624_vm2, %v614_v11 }
 0x1dd   : > { %1013 = vmatprep.mubr.bf16.mxu0 %v962_v60 }
 0x277   : > { %v1900_v12 = vpop.f32.mrb[0].mxu0 }
 0x278   : > { %v1902_v13 = vpop.f32.mrb[1].mxu0 }
 0x279   : > { %v1904_v14 = vpop.f32.mrb[2].mxu0  ;;  %v769_v15 = vmax.f32 %v1900_v12, %v1902_v13 }
 0x27a   : > { %v1908_v16 = vpop.f32.mrb[3].mxu0 }
 0x27b   : > { %770 = vmax.xlane.f32.xlu0 %v769_v15  ;;  %v772_v17 = vmax.f32 %v1904_v14, %v1908_v16 }
 0x27d   : > { %773 = vmax.xlane.f32.xlu1 %v772_v17 }
 0x27f   : > { %v1912_v18 = vpop.f32.mrb[4].mxu0 }
 0x280   : > { %v1914_v19 = vpop.f32.mrb[5].mxu0 }
 0x281   : > { %v1916_v20 = vpop.f32.mrb[6].mxu0  ;;  %v775_v21 = vmax.f32 %v1912_v18, %v1914_v19 }
 0x282   : > { %v1920_v22 = vpop.f32.mrb[7].mxu0 }
 0x283   : > { %776 = vmax.xlane.f32.xlu1 %v775_v21  ;;  %v778_v23 = vmax.f32 %v1916_v20, %v1920_v22 }
 0x287   : > { %779 = vmax.xlane.f32.xlu1 %v778_v23  ;;  %v1924_v24 = vpop.f32.mrb[8].mxu0 }
 0x288   : > { %v1926_v25 = vpop.f32.mrb[9].mxu0 }
 0x289   : > { %v1928_v26 = vpop.f32.mrb[10].mxu0  ;;  %v781_v27 = vmax.f32 %v1924_v24, %v1926_v25 }
 0x28a   : > { %v1932_v28 = vpop.f32.mrb[11].mxu0 }
 0x28b   : > { %782 = vmax.xlane.f32.xlu1 %v781_v27  ;;  %v784_v29 = vmax.f32 %v1928_v26, %v1932_v28 }
 0x28f   : > { %785 = vmax.xlane.f32.xlu1 %v784_v29  ;;  %v1936_v30 = vpop.f32.mrb[12].mxu0 }
 0x290   : > { %v1938_v31 = vpop.f32.mrb[13].mxu0 }
 0x291   : > { %v1940_v32 = vpop.f32.mrb[14].mxu0  ;;  %v787_v33 = vmax.f32 %v1936_v30, %v1938_v31 }
 0x292   : > { %v1944_v34 = vpop.f32.mrb[15].mxu0 }
 0x293   : > { %788 = vmax.xlane.f32.xlu1 %v787_v33  ;;  %v790_v35 = vmax.f32 %v1940_v32, %v1944_v34 }
 0x297   : > { %791 = vmax.xlane.f32.xlu1 %v790_v35  ;;  %v1948_v36 = vpop.f32.mrb[16].mxu0 }
 0x298   : > { %v1950_v37 = vpop.f32.mrb[17].mxu0 }
 0x299   : > { %v1952_v38 = vpop.f32.mrb[18].mxu0  ;;  %v793_v39 = vmax.f32 %v1948_v36, %v1950_v37 }
 0x29a   : > { %v1956_v40 = vpop.f32.mrb[19].mxu0 }
 0x29b   : > { %794 = vmax.xlane.f32.xlu1 %v793_v39  ;;  %v796_v41 = vmax.f32 %v1952_v38, %v1956_v40 }
 0x29f   : > { %797 = vmax.xlane.f32.xlu1 %v796_v41  ;;  %v1960_v42 = vpop.f32.mrb[20].mxu0 }
 0x2a0   : > { %v1962_v43 = vpop.f32.mrb[21].mxu0 }
 0x2a1   : > { %v1964_v44 = vpop.f32.mrb[22].mxu0  ;;  %v799_v45 = vmax.f32 %v1960_v42, %v1962_v43 }
 0x2a2   : > { %v1968_v46 = vpop.f32.mrb[23].mxu0 }
 0x2a3   : > { %800 = vmax.xlane.f32.xlu1 %v799_v45  ;;  %v802_v47 = vmax.f32 %v1964_v44, %v1968_v46 }
 0x2a7   : > { %803 = vmax.xlane.f32.xlu1 %v802_v47  ;;  %v1972_v48 = vpop.f32.mrb[24].mxu0 }
 0x2a8   : > { %v1974_v49 = vpop.f32.mrb[25].mxu0 }
 0x2a9   : > { %v1976_v50 = vpop.f32.mrb[26].mxu0  ;;  %v805_v51 = vmax.f32 %v1972_v48, %v1974_v49 }
 0x2aa   : > { %v1980_v52 = vpop.f32.mrb[27].mxu0 }
 0x2ab   : > { %806 = vmax.xlane.f32.xlu1 %v805_v51  ;;  %v808_v53 = vmax.f32 %v1976_v50, %v1980_v52 }
 0x2ad   : > { %809 = vmax.xlane.f32.xlu0 %v808_v53 }
 0x2af   : > { %v1984_v54 = vpop.f32.mrb[28].mxu0 }
 0x2b0   : > { %v1986_v55 = vpop.f32.mrb[29].mxu0 }
 0x2b1   : > { %v1988_v56 = vpop.f32.mrb[30].mxu0  ;;  %v811_v57 = vmax.f32 %v1984_v54, %v1986_v55 }
 0x2b2   : > { %v1992_v58 = vpop.f32.mrb[31].mxu0 }
 0x2b3   : > { %812 = vmax.xlane.f32.xlu1 %v811_v57  ;;  %v814_v59 = vmax.f32 %v1988_v56, %v1992_v58 }
 0x2b5   : > { %815 = vmax.xlane.f32.xlu0 %v814_v59 }
 0x308   : > { %v771_v62 = vpop.xlane.xlu0 %770 }
 0x309   : > { %v817_v63 = vsub.f32 %v1900_v12, %v771_v62  ;;  %v818_v0 = vsub.f32 %v1902_v13, %v771_v62 }
 0x30a   : > { %v774_v1 = vpop.xlane.xlu1 %773 }
 0x30b   : > { %v849_v2 = vmul.f32 1.442695, %v817_v63  ;;  %v851_v3 = vmul.f32 1.442695, %v818_v0  ;;  %v819_v4 = vsub.f32 %v1904_v14, %v774_v1  ;;  %v820_v5 = vsub.f32 %v1908_v16, %v774_v1 }
 0x30d   : > { %1380 = vpow2.f32 %v849_v2  ;;  %v853_v6 = vmul.f32 1.442695, %v819_v4  ;;  %v855_v7 = vmul.f32 1.442695, %v820_v5 }
 0x30e   : > { %1382 = vpow2.f32 %v851_v3 }
 0x30f   : > { %1384 = vpow2.f32 %v853_v6 }
 0x310   : > { %1386 = vpow2.f32 %v855_v7  ;;  %v777_v8 = vpop.xlane.xlu1 %776 }
 0x311   : > { %v821_v9 = vsub.f32 %v1912_v18, %v777_v8  ;;  %v822_v10 = vsub.f32 %v1914_v19, %v777_v8 }
 0x313   : > { %v857_v11 = vmul.f32 1.442695, %v821_v9  ;;  %v859_v12 = vmul.f32 1.442695, %v822_v10 }
 0x314   : > { %v780_v13 = vpop.xlane.xlu1 %779 }
 0x315   : > { %1388 = vpow2.f32 %v857_v11  ;;  %v823_v15 = vsub.f32 %v1916_v20, %v780_v13  ;;  %v824_v14 = vsub.f32 %v1920_v22, %v780_v13 }
 0x316   : > { %1390 = vpow2.f32 %v859_v12 }
 0x317   : > { %v1381_v16 = vpop.eup %1380  ;;  %v861_v17 = vmul.f32 1.442695, %v823_v15  ;;  %v863_v21 = vmul.f32 1.442695, %v824_v14 }
 0x318   : > { %v1383_v23 = vpop.eup %1382  ;;  %v783_v27 = vpop.xlane.xlu1 %782 }
 0x319   : > { %v1385_v29 = vpop.eup %1384  ;;  %1392 = vpow2.f32 %v861_v17  ;;  %v825_v18 = vsub.f32 %v1924_v24, %v783_v27  ;;  %v826_v19 = vsub.f32 %v1926_v25, %v783_v27  ;;  %v913_v33 = vadd.f32 %v1383_v23, %v1381_v16 }
 0x31a   : > { %v1387_v35 = vpop.eup %1386  ;;  %1394 = vpow2.f32 %v863_v21  ;;  %v965_v39 = vpack.c.bf16 %v1385_v29, %v1381_v16 }
 0x31b   : > { %v865_v41 = vmul.f32 1.442695, %v825_v18  ;;  %v867_v20 = vmul.f32 1.442695, %v826_v19  ;;  %914 = vadd.xlane.f32.xlu1 %v913_v33  ;;  %v916_v22 = vadd.f32 %v1387_v35, %v1385_v29  ;;  %v966_v45 = vpack.c.bf16 %v1387_v35, %v1383_v23 }
 0x31c   : > { %v786_v47 = vpop.xlane.xlu1 %785 }
 0x31d   : > { %1396 = vpow2.f32 %v865_v41  ;;  %v827_v51 = vsub.f32 %v1928_v26, %v786_v47  ;;  %v828_v53 = vsub.f32 %v1932_v28, %v786_v47  ;;  %917 = vadd.xlane.f32.xlu0 %v916_v22  ;;  %981 = vmatprep.subr.bf16.mxu0 %v966_v45 }
 0x31e   : > { %1398 = vpow2.f32 %v867_v20  ;;  %1251 = vmatprep.subr.bf16.mxu1 %v966_v45  ;;  %982 = vmatpush1.bf16.xpose.msra.mxu0 %v965_v39 }
 0x31f   : > { %v1389_v24 = vpop.eup %1388  ;;  %v869_v25 = vmul.f32 1.442695, %v827_v51  ;;  %v871_v57 = vmul.f32 1.442695, %v828_v53  ;;  %1259 = vmatpush1.bf16.xpose.msra.mxu1 %v965_v39 }
 0x320   : > { %v1391_v59 = vpop.eup %1390  ;;  %v789_v60 = vpop.xlane.xlu1 %788 }
 0x321   : > { %1400 = vpow2.f32 %v869_v25  ;;  %v829_v61 = vsub.f32 %v1936_v30, %v789_v60  ;;  %v830_v62 = vsub.f32 %v1938_v31, %v789_v60  ;;  %v919_v63 = vadd.f32 %v1391_v59, %v1389_v24 }
 0x322   : > { %1402 = vpow2.f32 %v871_v57 }
 0x323   : > { %v1393_v26 = vpop.eup %1392  ;;  %v873_v28 = vmul.f32 1.442695, %v829_v61  ;;  %v875_v0 = vmul.f32 1.442695, %v830_v62  ;;  %920 = vadd.xlane.f32.xlu1 %v919_v63 }
 0x324   : > { %v1395_v1 = vpop.eup %1394  ;;  %v792_v2 = vpop.xlane.xlu1 %791  ;;  %v967_v3 = vpack.c.bf16 %v1393_v26, %v1389_v24 }
 0x325   : > { %1404 = vpow2.f32 %v873_v28  ;;  %v831_v4 = vsub.f32 %v1940_v32, %v792_v2  ;;  %v832_v5 = vsub.f32 %v1944_v34, %v792_v2  ;;  %v922_v6 = vadd.f32 %v1395_v1, %v1393_v26 }
 0x326   : > { %1406 = vpow2.f32 %v875_v0  ;;  %v968_v7 = vpack.c.bf16 %v1395_v1, %v1391_v59 }
 0x327   : > { %v1397_v30 = vpop.eup %1396  ;;  %v877_v8 = vmul.f32 1.442695, %v831_v4  ;;  %v879_v31 = vmul.f32 1.442695, %v832_v5  ;;  %923 = vadd.xlane.f32.xlu0 %v922_v6 }
 0x328   : > { %v1399_v9 = vpop.eup %1398  ;;  %983 = vmatprep.subr.bf16.mxu0 %v968_v7  ;;  %1252 = vmatprep.subr.bf16.mxu1 %v968_v7  ;;  %v795_v10 = vpop.xlane.xlu1 %794 }
 0x329   : > { %1408 = vpow2.f32 %v877_v8  ;;  %984 = vmatpush1.bf16.xpose.msra.mxu0 %v967_v3  ;;  %1260 = vmatpush1.bf16.xpose.msra.mxu1 %v967_v3  ;;  %v833_v11 = vsub.f32 %v1948_v36, %v795_v10  ;;  %v834_v32 = vsub.f32 %v1950_v37, %v795_v10  ;;  %v925_v12 = vadd.f32 %v1399_v9, %v1397_v30 }
 0x32a   : > { %1410 = vpow2.f32 %v879_v31 }
 0x32b   : > { %v1401_v34 = vpop.eup %1400  ;;  %v881_v13 = vmul.f32 1.442695, %v833_v11  ;;  %v883_v15 = vmul.f32 1.442695, %v834_v32  ;;  %926 = vadd.xlane.f32.xlu1 %v925_v12 }
 0x32c   : > { %v1403_v14 = vpop.eup %1402  ;;  %v798_v16 = vpop.xlane.xlu1 %797  ;;  %v969_v17 = vpack.c.bf16 %v1401_v34, %v1397_v30 }
 0x32d   : > { %1412 = vpow2.f32 %v881_v13  ;;  %v835_v21 = vsub.f32 %v1952_v38, %v798_v16  ;;  %v836_v23 = vsub.f32 %v1956_v40, %v798_v16  ;;  %v928_v27 = vadd.f32 %v1403_v14, %v1401_v34 }
 0x32e   : > { %1414 = vpow2.f32 %v883_v15  ;;  %v970_v29 = vpack.c.bf16 %v1403_v14, %v1399_v9 }
 0x32f   : > { %v1405_v36 = vpop.eup %1404  ;;  %v885_v18 = vmul.f32 1.442695, %v835_v21  ;;  %v887_v37 = vmul.f32 1.442695, %v836_v23  ;;  %929 = vadd.xlane.f32.xlu0 %v928_v27 }
 0x330   : > { %v1407_v19 = vpop.eup %1406  ;;  %985 = vmatprep.subr.bf16.mxu0 %v970_v29  ;;  %1253 = vmatprep.subr.bf16.mxu1 %v970_v29  ;;  %v801_v33 = vpop.xlane.xlu1 %800 }
 0x331   : > { %1416 = vpow2.f32 %v885_v18  ;;  %986 = vmatpush1.bf16.xpose.msra.mxu0 %v969_v17  ;;  %1261 = vmatpush1.bf16.xpose.msra.mxu1 %v969_v17  ;;  %v837_v35 = vsub.f32 %v1960_v42, %v801_v33  ;;  %v838_v38 = vsub.f32 %v1962_v43, %v801_v33  ;;  %v931_v39 = vadd.f32 %v1407_v19, %v1405_v36 }
 0x332   : > { %1418 = vpow2.f32 %v887_v37 }
 0x333   : > { %v1409_v40 = vpop.eup %1408  ;;  %v889_v41 = vmul.f32 1.442695, %v837_v35  ;;  %v891_v20 = vmul.f32 1.442695, %v838_v38  ;;  %932 = vadd.xlane.f32.xlu1 %v931_v39 }
 0x334   : > { %v1411_v22 = vpop.eup %1410  ;;  %v804_v45 = vpop.xlane.xlu1 %803  ;;  %v971_v47 = vpack.c.bf16 %v1409_v40, %v1405_v36 }
 0x335   : > { %1420 = vpow2.f32 %v889_v41  ;;  %v839_v51 = vsub.f32 %v1964_v44, %v804_v45  ;;  %v840_v53 = vsub.f32 %v1968_v46, %v804_v45  ;;  %v934_v24 = vadd.f32 %v1411_v22, %v1409_v40  ;;  %v961_v40 = vld [vmem:[#allocation4] sm:$0xff]  ;;  %v963_v41 = vld [vmem:[#allocation4 + $0x10] sm:$0xff] }
 0x336   : > { %1422 = vpow2.f32 %v891_v20  ;;  %v972_v25 = vpack.c.bf16 %v1411_v22, %v1407_v19 }
 0x337   : > { %v1413_v42 = vpop.eup %1412  ;;  %v893_v57 = vmul.f32 1.442695, %v839_v51  ;;  %v895_v43 = vmul.f32 1.442695, %v840_v53  ;;  %935 = vadd.xlane.f32.xlu0 %v934_v24 }
 0x338   : > { %v1415_v59 = vpop.eup %1414  ;;  %987 = vmatprep.subr.bf16.mxu0 %v972_v25  ;;  %1254 = vmatprep.subr.bf16.mxu1 %v972_v25  ;;  %v807_v60 = vpop.xlane.xlu1 %806 }
 0x339   : > { %1424 = vpow2.f32 %v893_v57  ;;  %988 = vmatpush1.bf16.xpose.msra.mxu0 %v971_v47  ;;  %1262 = vmatpush1.bf16.xpose.msra.mxu1 %v971_v47  ;;  %v841_v61 = vsub.f32 %v1972_v48, %v807_v60  ;;  %v842_v44 = vsub.f32 %v1974_v49, %v807_v60  ;;  %v937_v62 = vadd.f32 %v1415_v59, %v1413_v42 }
 0x33a   : > { %1426 = vpow2.f32 %v895_v43  ;;  %v810_v46 = vpop.xlane.xlu0 %809 }
 0x33b   : > { %v1417_v63 = vpop.eup %1416  ;;  %v897_v26 = vmul.f32 1.442695, %v841_v61  ;;  %v899_v28 = vmul.f32 1.442695, %v842_v44  ;;  %938 = vadd.xlane.f32.xlu1 %v937_v62  ;;  %v843_v0 = vsub.f32 %v1976_v50, %v810_v46  ;;  %v844_v1 = vsub.f32 %v1980_v52, %v810_v46 }
 0x33c   : > { %v1419_v2 = vpop.eup %1418  ;;  %v973_v3 = vpack.c.bf16 %v1417_v63, %v1413_v42 }
 0x33d   : > { %1428 = vpow2.f32 %v897_v26  ;;  %v901_v4 = vmul.f32 1.442695, %v843_v0  ;;  %v903_v5 = vmul.f32 1.442695, %v844_v1  ;;  %v940_v6 = vadd.f32 %v1419_v2, %v1417_v63 }
 0x33e   : > { %1430 = vpow2.f32 %v899_v28  ;;  %v974_v48 = vpack.c.bf16 %v1419_v2, %v1415_v59 }
 0x33f   : > { %v1421_v49 = vpop.eup %1420  ;;  %1432 = vpow2.f32 %v901_v4  ;;  %941 = vadd.xlane.f32.xlu0 %v940_v6 }
 0x340   : > { %v1423_v7 = vpop.eup %1422  ;;  %1434 = vpow2.f32 %v903_v5  ;;  %989 = vmatprep.subr.bf16.mxu0 %v974_v48  ;;  %1255 = vmatprep.subr.bf16.mxu1 %v974_v48  ;;  %v813_v30 = vpop.xlane.xlu1 %812 }
 0x341   : > { %990 = vmatpush1.bf16.xpose.msra.mxu0 %v973_v3  ;;  %1263 = vmatpush1.bf16.xpose.msra.mxu1 %v973_v3  ;;  %v845_v50 = vsub.f32 %v1984_v54, %v813_v30  ;;  %v846_v52 = vsub.f32 %v1986_v55, %v813_v30  ;;  %v943_v8 = vadd.f32 %v1423_v7, %v1421_v49 }
 0x342   : > { %v816_v31 = vpop.xlane.xlu0 %815 }
 0x343   : > { %v1425_v9 = vpop.eup %1424  ;;  %v905_v10 = vmul.f32 1.442695, %v845_v50  ;;  %v907_v11 = vmul.f32 1.442695, %v846_v52  ;;  %944 = vadd.xlane.f32.xlu1 %v943_v8  ;;  %v847_v32 = vsub.f32 %v1988_v56, %v816_v31  ;;  %v848_v12 = vsub.f32 %v1992_v58, %v816_v31 }
 0x344   : > { %v1427_v34 = vpop.eup %1426  ;;  %v975_v13 = vpack.c.bf16 %v1425_v9, %v1421_v49  ;;  %v1078_v52 = vlaneseq }
 0x345   : > { %1436 = vpow2.f32 %v905_v10  ;;  %v909_v15 = vmul.f32 1.442695, %v847_v32  ;;  %v911_v14 = vmul.f32 1.442695, %v848_v12  ;;  %v946_v16 = vadd.f32 %v1427_v34, %v1425_v9 }
 0x346   : > { %1438 = vpow2.f32 %v907_v11  ;;  %v976_v54 = vpack.c.bf16 %v1427_v34, %v1423_v7  ;;  %v1079_v8 = vshrl.u32 %v1078_v52, 7 }
 0x347   : > { %v1429_v17 = vpop.eup %1428  ;;  %1440 = vpow2.f32 %v909_v15  ;;  %947 = vadd.xlane.f32.xlu0 %v946_v16 }
 0x348   : > { %v1431_v55 = vpop.eup %1430  ;;  %1442 = vpow2.f32 %v911_v14  ;;  %991 = vmatprep.subr.bf16.mxu0 %v976_v54  ;;  %1256 = vmatprep.subr.bf16.mxu1 %v976_v54  ;;  %v1080_v10 = vsub.s32 0, %v1079_v8  ;;  %v1093_v54 = vstv %s1092_s18  ;;  %s1506_s18 = scalar_lea.vmem %s2038_s14, 512 }
 0x349   : > { %v1433_v21 = vpop.eup %1432  ;;  %992 = vmatpush1.bf16.xpose.msra.mxu0 %v975_v13  ;;  %1264 = vmatpush1.bf16.xpose.msra.mxu1 %v975_v13  ;;  %v949_v56 = vadd.f32 %v1431_v55, %v1429_v17  ;;  %p1507_p7 = scmp.ne.s32.totalorder %s2038_s14, %s1506_s18  ;;  %p1514_p6 = scmp.lt.s32.totalorder %s1512_s17, %s1506_s18 }
 0x34a   : > { %v1435_v58 = vpop.eup %1434  ;;  %v977_v23 = vpack.c.bf16 %v1433_v21, %v1429_v17  ;;  %v1088_v17 = vld [vmem:[%s1087_s23] sm:$0xff] }
 0x34b   : > { %950 = vadd.xlane.f32.xlu1 %v949_v56  ;;  %v978_v27 = vpack.c.bf16 %v1435_v58, %v1431_v55  ;;  %v952_v29 = vadd.f32 %v1435_v58, %v1433_v21  ;;  %p1508_p4 = pnand %p1507_p7, %p2136_p2  ;;  %p1515_p9 = por %p1514_p6, %p1513_p1 }
 0x34d   : > { %993 = vmatprep.subr.bf16.mxu0 %v978_v27  ;;  %1257 = vmatprep.subr.bf16.mxu1 %v978_v27  ;;  %v1090_v27 = vld [vmem:[%s1087_s23 + $0x20] sm:$0xff]  ;;  %p1509_p0 = pneg %p1508_p4 }
 0x34e   : > { %953 = vadd.xlane.f32.xlu0 %v952_v29  ;;  %v1091_v29 = vld [vmem:[%s1087_s23 + $0x30] sm:$0xff] }
 0x34f   : > { %v1437_v36 = vpop.eup %1436  ;;  %p1516_p3 = pnand %p1515_p9, %p1509_p0 }
 0x350   : > { %v1439_v18 = vpop.eup %1438 }
 0x351   : > { %v1441_v37 = vpop.eup %1440  ;;  %994 = vmatpush1.bf16.xpose.msra.mxu0 %v977_v23  ;;  %1265 = vmatpush1.bf16.xpose.msra.mxu1 %v977_v23  ;;  %v955_v19 = vadd.f32 %v1439_v18, %v1437_v36  ;;  %v1089_v23 = vld [vmem:[%s1087_s23 + $0x10] sm:$0xff] }
 0x352   : > { %v1443_v33 = vpop.eup %1442  ;;  %v979_v35 = vpack.c.bf16 %v1441_v37, %v1437_v36 }
 0x353   : > { %956 = vadd.xlane.f32.xlu1 %v955_v19  ;;  %v980_v38 = vpack.c.bf16 %v1443_v33, %v1439_v18  ;;  %v958_v39 = vadd.f32 %v1443_v33, %v1441_v37 }
 0x355   : > { %995 = vmatprep.subr.bf16.mxu0 %v980_v38  ;;  %1258 = vmatprep.subr.bf16.mxu1 %v980_v38 }
 0x356   : > { %959 = vadd.xlane.f32.xlu0 %v958_v39 }
 0x359   : > { %996 = vmatpush1.bf16.xpose.msra.mxu0 %v979_v35  ;;  %1266 = vmatpush1.bf16.xpose.msra.mxu1 %v979_v35 }
 0x360   : > { %1014 = vmatmul.mubr.bf16.vlgmr.msra.gmra.mrb[32].mxu0 %v961_v40  ;;  %1022 = vmatmul.mubr.bf16.vlgmr.msra.gmra.mrb[0].mxu1 %v963_v41 }
 0x3a8   : > { %v915_v20 = vpop.xlane.xlu1 %914 }
 0x3a9   : > { %1444 = vrcp.f32 %v915_v20 }
 0x3aa   : > { %v918_v22 = vpop.xlane.xlu0 %917 }
 0x3ab   : > { %1446 = vrcp.f32 %v918_v22 }
 0x3b0   : > { %v921_v45 = vpop.xlane.xlu1 %920 }
 0x3b1   : > { %1448 = vrcp.f32 %v921_v45 }
 0x3b3   : > { %v1445_v47 = vpop.eup %1444 }
 0x3b4   : > { %1046 = vxpose.xlu1.b32.start [1/16] (narrow) %v1445_v47, 8  ;;  %v924_v51 = vpop.xlane.xlu0 %923 }
 0x3b5   : > { %1450 = vrcp.f32 %v924_v51  ;;  %v1447_v53 = vpop.eup %1446 }
 0x3b8   : > { %v927_v24 = vpop.xlane.xlu1 %926  ;;  %1047 = vxpose.xlu1.b32.cont [2/16] (narrow) %v1447_v53, 8 }
 0x3b9   : > { %1452 = vrcp.f32 %v927_v24 }
 0x3bb   : > { %v1449_v25 = vpop.eup %1448 }
 0x3bc   : > { %1048 = vxpose.xlu1.b32.cont [3/16] (narrow) %v1449_v25, 8  ;;  %v930_v42 = vpop.xlane.xlu0 %929 }
 0x3bd   : > { %1454 = vrcp.f32 %v930_v42 }
 0x3bf   : > { %v1451_v57 = vpop.eup %1450 }
 0x3c0   : > { %v933_v43 = vpop.xlane.xlu1 %932  ;;  %1049 = vxpose.xlu1.b32.cont [4/16] (narrow) %v1451_v57, 8 }
 0x3c1   : > { %1456 = vrcp.f32 %v933_v43 }
 0x3c3   : > { %v1453_v59 = vpop.eup %1452 }
 0x3c4   : > { %1050 = vxpose.xlu1.b32.cont [5/16] (narrow) %v1453_v59, 8  ;;  %v936_v60 = vpop.xlane.xlu0 %935 }
 0x3c5   : > { %1458 = vrcp.f32 %v936_v60 }
 0x3c7   : > { %v1455_v61 = vpop.eup %1454 }
 0x3c8   : > { %v939_v44 = vpop.xlane.xlu1 %938  ;;  %1051 = vxpose.xlu1.b32.cont [6/16] (narrow) %v1455_v61, 8 }
 0x3c9   : > { %1460 = vrcp.f32 %v939_v44 }
 0x3cb   : > { %v1457_v62 = vpop.eup %1456 }
 0x3cc   : > { %1052 = vxpose.xlu1.b32.cont [7/16] (narrow) %v1457_v62, 8  ;;  %v942_v46 = vpop.xlane.xlu0 %941 }
 0x3cd   : > { %1462 = vrcp.f32 %v942_v46 }
 0x3cf   : > { %v1459_v63 = vpop.eup %1458 }
 0x3d0   : > { %v945_v26 = vpop.xlane.xlu1 %944  ;;  %1053 = vxpose.xlu1.b32.cont [8/16] (narrow) %v1459_v63, 8 }
 0x3d1   : > { %1464 = vrcp.f32 %v945_v26 }
 0x3d3   : > { %v1461_v28 = vpop.eup %1460 }
 0x3d4   : > { %1054 = vxpose.xlu1.b32.cont [9/16] (narrow) %v1461_v28, 8  ;;  %v948_v0 = vpop.xlane.xlu0 %947 }
 0x3d5   : > { %1466 = vrcp.f32 %v948_v0 }
 0x3d7   : > { %v1463_v1 = vpop.eup %1462 }
 0x3d8   : > { %v951_v2 = vpop.xlane.xlu1 %950  ;;  %1055 = vxpose.xlu1.b32.cont [10/16] (narrow) %v1463_v1, 8 }
 0x3d9   : > { %1468 = vrcp.f32 %v951_v2 }
 0x3db   : > { %v1465_v3 = vpop.eup %1464  ;;  %v954_v4 = vpop.xlane.xlu0 %953 }
 0x3dc   : > { %1056 = vxpose.xlu1.b32.cont [11/16] (narrow) %v1465_v3, 8  ;;  %1470 = vrcp.f32 %v954_v4 }
 0x3df   : > { %v1467_v5 = vpop.eup %1466 }
 0x3e0   : > { %v957_v6 = vpop.xlane.xlu1 %956  ;;  %1057 = vxpose.xlu1.b32.cont [12/16] (narrow) %v1467_v5, 8 }
 0x3e1   : > { %1472 = vrcp.f32 %v957_v6 }
 0x3e3   : > { %v1469_v48 = vpop.eup %1468  ;;  %v960_v49 = vpop.xlane.xlu0 %959 }
 0x3e4   : > { %1058 = vxpose.xlu1.b32.cont [13/16] (narrow) %v1469_v48, 8  ;;  %1474 = vrcp.f32 %v960_v49 }
 0x3e6   : > { %v1471_v7 = vpop.eup %1470 }
 0x3e8   : > { %1059 = vxpose.xlu1.b32.cont [14/16] (narrow) %v1471_v7, 8 }
 0x3eb   : > { %v1473_v30 = vpop.eup %1472 }
 0x3ec   : > { %1060 = vxpose.xlu1.b32.cont [15/16] (narrow) %v1473_v30, 8 }
 0x3ee   : > { %v1475_v50 = vpop.eup %1474 }
 0x3f0   : > { %1061 = vxpose.xlu1.b32.end [16/16] (narrow) %v1475_v50, 8 }
 0x433   : > { %v1015_v31 = vpop.f32.mrb[32].mxu0  ;;  %v1023_v9 = vpop.f32.mrb[0].mxu1 }
 0x434   : > { %v1017_v11 = vpop.f32.mrb[33].mxu0  ;;  %v1025_v32 = vpop.f32.mrb[1].mxu1 }
 0x435   : > { %v1018_v12 = vpop.f32.mrb[34].mxu0  ;;  %v1026_v34 = vpop.f32.mrb[2].mxu1 }
 0x436   : > { %v1062_v13 = vpop.trf.xlu1  ;;  %v1020_v15 = vpop.f32.mrb[35].mxu0 }
 0x437   : > { %v1081_v14 = vrot.slane %v1062_v13, %v1080_v10  ;;  %v1028_v16 = vpop.f32.mrb[3].mxu1 }
 0x439   : > { %v1082_v55 = vmul.f32 %v1081_v14, %v1015_v31  ;;  %v1083_v21 = vmul.f32 %v1081_v14, %v1018_v12  ;;  %v1084_v56 = vmul.f32 %v1081_v14, %v1023_v9  ;;  %v1085_v58 = vmul.f32 %v1081_v14, %v1026_v34 }
 0x43b   : > { %v1094_v36 = vmul.f32 %v1093_v54, %v1082_v55  ;;  %v1095_v18 = vmul.f32 %v1093_v54, %v1083_v21  ;;  %v1096_v37 = vmul.f32 %v1093_v54, %v1084_v56  ;;  %v1097_v19 = vmul.f32 %v1093_v54, %v1085_v58 }
 0x43d   : > { %v1098_v33 = vadd.f32 %v1094_v36, %v1088_v17  ;;  %v1099_v35 = vadd.f32 %v1095_v18, %v1089_v23  ;;  %v1100_v38 = vadd.f32 %v1096_v37, %v1090_v27  ;;  %v1101_v39 = vadd.f32 %v1097_v19, %v1091_v29 }
 0x43f   : > { %1102 = vst [vmem:[%s1843_s15] sm:$0xff] %v1098_v33  ;;  %1103 = vst [vmem:[%s1843_s15 + $0x8] sm:$0xff] %v1099_v35 }
 0x440   : > { %1104 = vst [vmem:[%s1843_s15 + $0x10] sm:$0xff] %v1100_v38  ;;  %1105 = vst [vmem:[%s1843_s15 + $0x18] sm:$0xff] %v1101_v39 }
 0x441   : > { %1519 = shalt.err (!%p1516_p3)
}
 0x442   : > { %s1520_s15 = scalar_lea.hbm %s2036_s24, 512  ;;  %s1524_s13 = scalar_lea.hbm %s2134_s25, 2048 }
 0x443   : > { %p1521_p11 = scmp.ne.s32.totalorder %s2036_s24, %s1520_s15  ;;  %p1525_p8 = scmp.lt.u32.totalorder %s2036_s24, %s2134_s25 }
 0x444   : > { %p1526_p10 = scmp.lt.u32.totalorder %s1524_s13, %s1520_s15  ;;  %p1528_p7 = scmp.lt.u32.totalorder %s1520_s15, %s2036_s24 }
 0x445   : > { %p1522_p13 = pnand %p1521_p11, %p2136_p2 }
 0x446   : > { %p1527_p12 = por %p1526_p10, %p1525_p8 }
 0x447   : > { %p1523_p5 = pneg %p1522_p13 }
 0x448   : > { %p1529_p4 = por %p1528_p7, %p1527_p12 }
 0x44a   : > { %p1530_p0 = pnand %p1529_p4, %p1523_p5 }
 0x44c   : > { %1533 = shalt.err (!%p1530_p0)
}
 0x44d   : > { %s1636_s18 = smov 128   ;;  %s1637_s22 = smov 256  }
 0x44e   : > { %s1638_s21 = smov 8  }
 0x44f   : > { %1269 = dma.vmem_to_hbm [thread:$0]  (%p2136_p2), %s2038_s14, 512, %s2036_s24, %s2046_s20, %s1636_s18, %s1637_s22, %s1638_s21  }
 0x450 PF: > { %p1280_p1 = scmp.ge.s32.totalorder %s1628_s16, 2  ;;  %s1136_s17 = sand.u32 1, %s1588_s29  }
 0x451   : > { %p2137_p6 = scmp.ne.s32.totalorder %s2131_s7, 0  ;;  %s1137_s15 = scalar_lea.sflag [#allocation8], %s1136_s17 }
 0x453   : > { %p1276_p9 = pnand %p1280_p1, %p2137_p6 }
 0x455   : > { %1583 = dma.done.wait (!%p1276_p9), %s1137_s15, 512  }
 0x456   : > { %1585 = vsyncadd (!%p1276_p9), %s1137_s15, 4294966784  ;;  %s25_s16 = sadd.s32 1, %s1628_s16   ;;  %s2138_s28 = smov %s1774_s10 }
 0x457   : > { %p22_p3 = scmp.ge.s32.totalorder %s25_s16, 6   ;;  %s2139_s13 = sld [smem:[#allocation12_spill]] }
 0x458   : > { %s2140_s14 = sld [smem:[#allocation13_spill]]  ;;  %s2141_s7 = sld [smem:[#allocation14_spill]] }
 0x459   : > { %s2142_s15 = sld [smem:[#allocation15_spill]]  ;;  %s2143_s29 = smov %s1592_s30 }
 0x45a   : > { %s2144_s30 = smov %s1596_s9  ;;  %s2145_s9 = smov %s1777_s19 }
 0x45b   : > { %s2146_s10 = smov %s1604_s11  ;;  %s2147_s11 = smov %s1608_s12 }
 0x45c   : > { %s2148_s12 = smov %s2138_s28  ;;  %24 = sbr.rel (!%p22_p3) target bundleno = 12 (0xc), region = 103 }
 0x463   :  { %1142 = vsyncpa [#allocation7], 1 }
 0x464   :  { %1144 = vsyncpa [#allocation7 + $0x1], 1 }
 0x465   :  { %1145 = vsyncpa [#allocation8], 1 }
 0x466   :  { %1147 = vsyncpa [#allocation8 + $0x1], 1 }

</bundles_post_ra>
